<compile_context>
chip_gen: v7x
topology: tpu7x:2x2x1
jax: 0.10.0
libtpu: 0.0.40
codegen_flags: <defaults>
</compile_context>

<pallas_src>
import functools

import jax
import jax.numpy as jnp
import numpy as np
from jax import lax
from jax.experimental import pallas as pl
from jax.experimental.pallas import tpu as pltpu


def _conv_bn_act_kernel(x_ref, w_ref, scale_ref, bias_ref, o_ref, *,
                        kw_tot, pad, wo, expand_kw):
    # x_ref:     (T, 1, Cin, L)     T tap slabs, flattened spatial tile (L lanes)
    # w_ref:     (KH*KW, Cout, Cin) un-scaled conv weights (compute dtype)
    # scale_ref: (Cout, 1) f32      folded BN scale  gamma / sqrt(var + eps)
    # bias_ref:  (Cout, 1) f32      folded BN bias   beta - mean * scale
    # o_ref:     (1, Cout, L)       lane-dense output tile
    n_taps = x_ref.shape[0]
    l = x_ref.shape[-1]
    cout = w_ref.shape[1]
    acc0 = jnp.zeros((cout, l), jnp.float32)

    if expand_kw:
        # stride==1 path: x_ref holds the KH vertically-shifted row slabs; the
        # KW horizontal taps are made here with XLU lane rotations + hoisted
        # edge masks (no slice/concat copies).
        col = lax.broadcasted_iota(jnp.int32, (1, l), 1) % wo
        masks = []
        for kw in range(kw_tot):
            off = kw - pad
            masks.append(None if off == 0 else ((col + off >= 0) & (col + off < wo)))

        def kh_body(kh, acc):
            base = x_ref[kh, 0]                       # (Cin, L), lane-dense load
            for kw in range(kw_tot):                  # small, statically unrolled
                off = kw - pad
                if off == 0:
                    v = base
                else:
                    v = pltpu.roll(base, shift=(-off) % l, axis=1)
                    # NOTE(v5e): select on bf16 values costs pack/unpack there;
                    # acceptable at these sizes (VPU is not the critical slot).
                    v = jnp.where(masks[kw], v, jnp.zeros_like(v))
                acc = acc + jnp.dot(w_ref[kh * kw_tot + kw], v,
                                    preferred_element_type=jnp.float32)
            return acc

        acc = lax.fori_loop(0, n_taps, kh_body, acc0)
    else:
        # fallback (stride>1 / even kernels): taps are already full im2col rows.
        def t_body(t, acc):
            return acc + jnp.dot(w_ref[t], x_ref[t, 0],
                                 preferred_element_type=jnp.float32)
        acc = lax.fori_loop(0, n_taps, t_body, acc0)

    y = acc * scale_ref[...] + bias_ref[...]          # eval-mode BN, f32 epilogue
    o_ref[0] = (y * jax.nn.sigmoid(y)).astype(o_ref.dtype)   # SiLU


def _pick_lane_tile(s_flat, wo, n_batch, max_lanes):
    """Largest wo-aligned divisor of s_flat within budget; prefer lane-dense
    (128-multiple) tiles and >=2 total grid steps (v7x has 2 TensorCores)."""
    cands = [d for d in range(wo, s_flat + 1, wo)
             if s_flat % d == 0 and d <= max_lanes]
    if not cands:
        return s_flat                     # whole image (still a legal BlockSpec)

    def best(pool):
        multi = [d for d in pool if n_batch * (s_flat // d) >= 2]
        return max(multi) if multi else max(pool)

    dense = [d for d in cands if d % 128 == 0]
    return best(dense) if dense else best(cands)


def conv_bn_act(x_nchw, weight_oihw, gamma, beta, running_mean, running_var, *,
                stride=1, eps=1e-5, compute_dtype=jnp.bfloat16):
    n, cin, h, w = x_nchw.shape
    cout, _, kh_t, kw_t = weight_oihw.shape
    pad = kh_t // 2
    ho = (h + 2 * pad - kh_t) // stride + 1
    wo = (w + 2 * pad - kw_t) // stride + 1
    s_flat = ho * wo

    # ---- BN folding (eval mode): per-Cout f32 scale & bias applied in the
    #      kernel epilogue (keeps bf16 weight error independent of BN scale).
    scale = (gamma / jnp.sqrt(running_var + eps)).astype(jnp.float32).reshape(cout, 1)
    bias = (beta.astype(jnp.float32).reshape(cout, 1)
            - running_mean.astype(jnp.float32).reshape(cout, 1) * scale)

    # weights as (KH*KW, Cout, Cin) so the kernel indexes one tap per dot.
    w_taps = jnp.transpose(weight_oihw, (2, 3, 0, 1)).reshape(kh_t * kw_t, cout, cin)
    w_taps = w_taps.astype(compute_dtype)

    # ---- Build the tap slabs (flattened spatial last dim, NCHW preserved).
    if stride == 1 and wo == w:
        # vertical-only halo unfold; horizontal taps handled in-kernel.
        xp = jnp.pad(x_nchw, ((0, 0), (0, 0), (pad, pad), (0, 0)))
        taps = jnp.stack([xp[:, :, k:k + ho, :] for k in range(kh_t)], axis=0)
        taps = taps.reshape(kh_t, n, cin, s_flat).astype(compute_dtype)
        n_taps, expand_kw = kh_t, True
    else:
        xp = jnp.pad(x_nchw, ((0, 0), (0, 0), (pad, pad), (pad, pad)))
        pieces = []
        for kh in range(kh_t):
            for kw in range(kw_t):
                pieces.append(lax.slice(
                    xp, (0, 0, kh, kw),
                    (n, cin, kh + (ho - 1) * stride + 1, kw + (wo - 1) * stride + 1),
                    (1, 1, stride, stride)))
        taps = jnp.stack(pieces, axis=0).reshape(kh_t * kw_t, n, cin, s_flat)
        taps = taps.astype(compute_dtype)
        n_taps, expand_kw = kh_t * kw_t, False

    # ---- Generation-aware budgets (VMEM capacity differs on v5e/v6e vs v7x).
    try:
        vmem_cap = int(pltpu.get_tpu_info().vmem_capacity_bytes)
    except Exception:                                  # pragma: no cover
        vmem_cap = 64 << 20                            # conservative (v7x-sized)
    c_sz = np.dtype(compute_dtype).itemsize
    o_sz = np.dtype(x_nchw.dtype).itemsize
    bytes_per_lane = 2 * n_taps * cin * c_sz + 2 * cout * o_sz  # dbl-buffered blocks
    vmem_lanes = int(0.4 * vmem_cap) // max(bytes_per_lane, 1)
    vreg_lanes = (128 * 1024) // (cout * 4)            # f32 acc <= ~half the vregs
    max_lanes = max(min(vmem_lanes, vreg_lanes), wo)

    l_tile = _pick_lane_tile(s_flat, wo, n, max_lanes)
    n_tiles = s_flat // l_tile
    if expand_kw:
        # invariants the in-kernel column edge-mask relies on
        assert pad < wo and l_tile % wo == 0

    need = (bytes_per_lane * l_tile                    # input taps + output tile
            + kh_t * kw_t * cout * cin * c_sz          # weights (constant block)
            + 2 * cout * 4)                            # scale + bias
    vmem_limit = int(min(max(2 * need, 16 << 20), int(0.75 * vmem_cap)))

    kern = functools.partial(_conv_bn_act_kernel, kw_tot=kw_t, pad=pad, wo=wo,
                             expand_kw=expand_kw)

    out_flat = pl.pallas_call(
        kern,
        out_shape=jax.ShapeDtypeStruct((n, cout, s_flat), x_nchw.dtype),
        grid_spec=pltpu.PrefetchScalarGridSpec(
            num_scalar_prefetch=0,
            grid=(n, n_tiles),                         # batch x lane tiles
            in_specs=[
                pl.BlockSpec((n_taps, 1, cin, l_tile), lambda b, t: (0, b, 0, t)),
                pl.BlockSpec((kh_t * kw_t, cout, cin), lambda b, t: (0, 0, 0)),
                pl.BlockSpec((cout, 1), lambda b, t: (0, 0)),
                pl.BlockSpec((cout, 1), lambda b, t: (0, 0)),
            ],
            out_specs=pl.BlockSpec((1, cout, l_tile), lambda b, t: (b, 0, t)),
        ),
        compiler_params=pltpu.CompilerParams(
            dimension_semantics=("parallel", "parallel"),
            vmem_limit_bytes=vmem_limit),
    )(taps, w_taps, scale, bias)

    # trailing-dim reshape only: output is already NCHW-ordered (free).
    return out_flat.reshape(n, cout, ho, wo)


if __name__ == "__main__":
    # module config: ConvBnAct(in_chs=4, out_chs=8, kernel_size=3, stride=1)
    in_chs, out_chs, ksize, stride = 4, 8, 3, 1
    n, h, w = 2, 16, 16
    eps = 1e-5

    key = jax.random.PRNGKey(0)
    k1, k2, k3, k4, k5, k6 = jax.random.split(key, 6)
    x = jax.random.normal(k1, (n, in_chs, h, w), jnp.float32)
    weight = 0.1 * jax.random.normal(k2, (out_chs, in_chs, ksize, ksize), jnp.float32)
    gamma = 1.0 + 0.1 * jax.random.normal(k3, (out_chs,), jnp.float32)
    beta = 0.1 * jax.random.normal(k4, (out_chs,), jnp.float32)
    running_mean = 0.1 * jax.random.normal(k5, (out_chs,), jnp.float32)
    running_var = jnp.abs(jax.random.normal(k6, (out_chs,), jnp.float32)) + 0.5

    # pure-JAX reference (conv -> eval-mode BN -> SiLU), NCHW, f32
    ref = jax.lax.conv_general_dilated(
        x, weight, (stride, stride),
        [(ksize // 2, ksize // 2), (ksize // 2, ksize // 2)],
        dimension_numbers=("NCHW", "OIHW", "NCHW"))
    s = (gamma / jnp.sqrt(running_var + eps)).reshape(1, out_chs, 1, 1)
    b = (beta - running_mean * gamma / jnp.sqrt(running_var + eps)).reshape(1, out_chs, 1, 1)
    ref = ref * s + b
    ref = ref * jax.nn.sigmoid(ref)

    # f32 MXU operands: tight check
    out_f32 = jax.block_until_ready(conv_bn_act(
        x, weight, gamma, beta, running_mean, running_var,
        stride=stride, eps=eps, compute_dtype=jnp.float32))
    assert out_f32.shape == (n, out_chs, h, w), out_f32.shape
    assert jnp.allclose(out_f32, ref, atol=1e-4, rtol=1e-4), \
        float(jnp.max(jnp.abs(out_f32 - ref)))

    # bf16 MXU operands (default fast path), f32 accumulation + f32 BN/SiLU epilogue
    out_bf16 = jax.block_until_ready(conv_bn_act(
        x, weight, gamma, beta, running_mean, running_var,
        stride=stride, eps=eps, compute_dtype=jnp.bfloat16))
    assert out_bf16.shape == (n, out_chs, h, w), out_bf16.shape
    assert jnp.allclose(out_bf16, ref, atol=5e-2, rtol=5e-2), \
        float(jnp.max(jnp.abs(out_bf16 - ref)))

    print("KERNEL_OK")
</pallas_src>

<mosaic_0001>
module attributes {stable_mosaic.version = 11 : i64} {
  func.func @_conv_bn_act_kernel(%arg0: i32, %arg1: i32, %arg2: memref<3x1x4x256xf32, #tpu.memory_space<vmem>>, %arg3: memref<9x8x4xf32, #tpu.memory_space<vmem>>, %arg4: memref<8x1xf32, #tpu.memory_space<vmem>>, %arg5: memref<8x1xf32, #tpu.memory_space<vmem>>, %arg6: memref<1x8x256xf32, #tpu.memory_space<vmem>>) attributes {dimension_semantics = [#tpu.dimension_semantics<parallel>, #tpu.dimension_semantics<parallel>], iteration_bounds = array<i64: 2, 1>, scalar_prefetch = 0 : i64, scratch_operands = 0 : i64, tpu.core_type = #tpu.core_type<tc>, window_params = [{transform_indices = @transform_0, window_bounds = array<i64: 3, 1, 4, 256>}, {pipeline_mode = #tpu.pipeline_mode<synchronous>, transform_indices = @transform_1, window_bounds = array<i64: 9, 8, 4>}, {pipeline_mode = #tpu.pipeline_mode<synchronous>, transform_indices = @transform_2, window_bounds = array<i64: 8, 1>}, {pipeline_mode = #tpu.pipeline_mode<synchronous>, transform_indices = @transform_3, window_bounds = array<i64: 8, 1>}, {transform_indices = @transform_4, window_bounds = array<i64: 1, 8, 256>}]} {
    %cst = arith.constant 0.000000e+00 : f32
    %0 = vector.broadcast %cst : f32 to vector<8x256xf32>
    %1 = tpu.iota {dimensions = array<i32: 1>} : vector<1x256xi32>
    %c16_i32 = arith.constant 16 : i32
    %c0_i32 = arith.constant 0 : i32
    %2 = arith.cmpi eq, %c16_i32, %c0_i32 : i32
    %c1_i32 = arith.constant 1 : i32
    %3 = arith.select %2, %c1_i32, %c16_i32 : i32
    %4 = vector.broadcast %3 : i32 to vector<1x256xi32>
    %5 = arith.remsi %1, %4 : vector<1x256xi32>
    %c0_i32_0 = arith.constant 0 : i32
    %6 = vector.broadcast %c0_i32_0 : i32 to vector<1x256xi32>
    %7 = arith.cmpi ne, %5, %6 : vector<1x256xi32>
    %c0_i32_1 = arith.constant 0 : i32
    %8 = vector.broadcast %c0_i32_1 : i32 to vector<1x256xi32>
    %9 = arith.cmpi slt, %5, %8 : vector<1x256xi32>
    %c0_i32_2 = arith.constant 0 : i32
    %10 = arith.cmpi slt, %3, %c0_i32_2 : i32
    %11 = vector.broadcast %10 : i1 to vector<1x256xi1>
    %12 = vector.broadcast %11 : vector<1x256xi1> to vector<1x256xi1>
    %13 = arith.xori %9, %12 : vector<1x256xi1>
    %14 = arith.andi %13, %7 : vector<1x256xi1>
    %15 = vector.broadcast %3 : i32 to vector<1x256xi32>
    %16 = arith.addi %5, %15 : vector<1x256xi32>
    %17 = arith.select %14, %16, %5 : vector<1x256xi1>, vector<1x256xi32>
    %c-1_i32 = arith.constant -1 : i32
    %18 = vector.broadcast %c-1_i32 : i32 to vector<1x256xi32>
    %19 = arith.addi %17, %18 : vector<1x256xi32>
    %c0_i32_3 = arith.constant 0 : i32
    %20 = vector.broadcast %c0_i32_3 : i32 to vector<1x256xi32>
    %21 = arith.cmpi sge, %19, %20 : vector<1x256xi32>
    %c-1_i32_4 = arith.constant -1 : i32
    %22 = vector.broadcast %c-1_i32_4 : i32 to vector<1x256xi32>
    %23 = arith.addi %17, %22 : vector<1x256xi32>
    %c16_i32_5 = arith.constant 16 : i32
    %24 = vector.broadcast %c16_i32_5 : i32 to vector<1x256xi32>
    %25 = arith.cmpi slt, %23, %24 : vector<1x256xi32>
    %26 = arith.andi %21, %25 : vector<1x256xi1>
    %c1_i32_6 = arith.constant 1 : i32
    %27 = vector.broadcast %c1_i32_6 : i32 to vector<1x256xi32>
    %28 = arith.addi %17, %27 : vector<1x256xi32>
    %c0_i32_7 = arith.constant 0 : i32
    %29 = vector.broadcast %c0_i32_7 : i32 to vector<1x256xi32>
    %30 = arith.cmpi sge, %28, %29 : vector<1x256xi32>
    %c1_i32_8 = arith.constant 1 : i32
    %31 = vector.broadcast %c1_i32_8 : i32 to vector<1x256xi32>
    %32 = arith.addi %17, %31 : vector<1x256xi32>
    %c16_i32_9 = arith.constant 16 : i32
    %33 = vector.broadcast %c16_i32_9 : i32 to vector<1x256xi32>
    %34 = arith.cmpi slt, %32, %33 : vector<1x256xi32>
    %35 = arith.andi %30, %34 : vector<1x256xi1>
    %c0_i32_10 = arith.constant 0 : i32
    %c3_i32 = arith.constant 3 : i32
    %36 = arith.addi %c0_i32_10, %c3_i32 : i32
    %c1_i32_11 = arith.constant 1 : i32
    %37 = scf.for %arg7 = %c0_i32_10 to %36 step %c1_i32_11 iter_args(%arg8 = %0) -> (vector<8x256xf32>)  : i32 {
      %53 = arith.index_cast %arg7 : i32 to index
      %c0_20 = arith.constant 0 : index
      %c0_21 = arith.constant 0 : index
      %c0_22 = arith.constant 0 : index
      %54 = vector.load %arg2[%53, %c0_20, %c0_21, %c0_22] : memref<3x1x4x256xf32, #tpu.memory_space<vmem>>, vector<1x1x4x256xf32>
      %55 = vector.shape_cast %54 : vector<1x1x4x256xf32> to vector<4x256xf32>
      %c1_i32_23 = arith.constant 1 : i32
      %56 = tpu.dynamic_rotate %55 by %c1_i32_23 dim 1 : vector<4x256xf32>, i32 -> vector<4x256xf32>
      %cst_24 = arith.constant 0.000000e+00 : f32
      %57 = vector.broadcast %cst_24 : f32 to vector<4x256xf32>
      %58 = vector.shape_cast %26 : vector<1x256xi1> to vector<1x256xi1>
      %59 = vector.broadcast %58 : vector<1x256xi1> to vector<4x256xi1>
      %60 = arith.select %59, %56, %57 : vector<4x256xi1>, vector<4x256xf32>
      %c3_i32_25 = arith.constant 3 : i32
      %61 = arith.muli %arg7, %c3_i32_25 : i32
      %c0_i32_26 = arith.constant 0 : i32
      %62 = arith.addi %61, %c0_i32_26 : i32
      %63 = arith.index_cast %62 : i32 to index
      %c0_27 = arith.constant 0 : index
      %c0_28 = arith.constant 0 : index
      %64 = vector.load %arg3[%63, %c0_27, %c0_28] : memref<9x8x4xf32, #tpu.memory_space<vmem>>, vector<1x8x4xf32>
      %65 = vector.shape_cast %64 : vector<1x8x4xf32> to vector<8x4xf32>
      %cst_29 = arith.constant dense<0.000000e+00> : vector<8x256xf32>
      %66 = tpu.matmul %65, %60, %cst_29 {dimension_numbers = #tpu.dot_dimension_numbers<[1], [0], [0], [1], [0, 0, 1, 1], [], []>} : vector<8x4xf32>, vector<4x256xf32>, vector<8x256xf32> -> vector<8x256xf32>
      %67 = arith.addf %arg8, %66 : vector<8x256xf32>
      %c3_i32_30 = arith.constant 3 : i32
      %68 = arith.muli %arg7, %c3_i32_30 : i32
      %c1_i32_31 = arith.constant 1 : i32
      %69 = arith.addi %68, %c1_i32_31 : i32
      %70 = arith.index_cast %69 : i32 to index
      %c0_32 = arith.constant 0 : index
      %c0_33 = arith.constant 0 : index
      %71 = vector.load %arg3[%70, %c0_32, %c0_33] : memref<9x8x4xf32, #tpu.memory_space<vmem>>, vector<1x8x4xf32>
      %72 = vector.shape_cast %71 : vector<1x8x4xf32> to vector<8x4xf32>
      %cst_34 = arith.constant dense<0.000000e+00> : vector<8x256xf32>
      %73 = tpu.matmul %72, %55, %cst_34 {dimension_numbers = #tpu.dot_dimension_numbers<[1], [0], [0], [1], [0, 0, 1, 1], [], []>} : vector<8x4xf32>, vector<4x256xf32>, vector<8x256xf32> -> vector<8x256xf32>
      %74 = arith.addf %67, %73 : vector<8x256xf32>
      %c255_i32 = arith.constant 255 : i32
      %75 = tpu.dynamic_rotate %55 by %c255_i32 dim 1 : vector<4x256xf32>, i32 -> vector<4x256xf32>
      %cst_35 = arith.constant 0.000000e+00 : f32
      %76 = vector.broadcast %cst_35 : f32 to vector<4x256xf32>
      %77 = vector.shape_cast %35 : vector<1x256xi1> to vector<1x256xi1>
      %78 = vector.broadcast %77 : vector<1x256xi1> to vector<4x256xi1>
      %79 = arith.select %78, %75, %76 : vector<4x256xi1>, vector<4x256xf32>
      %c3_i32_36 = arith.constant 3 : i32
      %80 = arith.muli %arg7, %c3_i32_36 : i32
      %c2_i32 = arith.constant 2 : i32
      %81 = arith.addi %80, %c2_i32 : i32
      %82 = arith.index_cast %81 : i32 to index
      %c0_37 = arith.constant 0 : index
      %c0_38 = arith.constant 0 : index
      %83 = vector.load %arg3[%82, %c0_37, %c0_38] : memref<9x8x4xf32, #tpu.memory_space<vmem>>, vector<1x8x4xf32>
      %84 = vector.shape_cast %83 : vector<1x8x4xf32> to vector<8x4xf32>
      %cst_39 = arith.constant dense<0.000000e+00> : vector<8x256xf32>
      %85 = tpu.matmul %84, %79, %cst_39 {dimension_numbers = #tpu.dot_dimension_numbers<[1], [0], [0], [1], [0, 0, 1, 1], [], []>} : vector<8x4xf32>, vector<4x256xf32>, vector<8x256xf32> -> vector<8x256xf32>
      %86 = arith.addf %74, %85 : vector<8x256xf32>
      scf.yield %86 : vector<8x256xf32>
    }
    %c3_i32_12 = arith.constant 3 : i32
    %c0 = arith.constant 0 : index
    %c0_13 = arith.constant 0 : index
    %38 = vector.load %arg4[%c0, %c0_13] : memref<8x1xf32, #tpu.memory_space<vmem>>, vector<8x1xf32>
    %39 = vector.broadcast %38 : vector<8x1xf32> to vector<8x256xf32>
    %40 = arith.mulf %37, %39 : vector<8x256xf32>
    %c0_14 = arith.constant 0 : index
    %c0_15 = arith.constant 0 : index
    %41 = vector.load %arg5[%c0_14, %c0_15] : memref<8x1xf32, #tpu.memory_space<vmem>>, vector<8x1xf32>
    %42 = vector.broadcast %41 : vector<8x1xf32> to vector<8x256xf32>
    %43 = arith.addf %40, %42 : vector<8x256xf32>
    %44 = arith.negf %43 : vector<8x256xf32>
    %45 = math.exp %44 : vector<8x256xf32>
    %cst_16 = arith.constant 1.000000e+00 : f32
    %46 = vector.broadcast %cst_16 : f32 to vector<8x256xf32>
    %47 = arith.addf %46, %45 : vector<8x256xf32>
    %48 = arith.divf %46, %47 : vector<8x256xf32>
    %49 = arith.mulf %43, %48 : vector<8x256xf32>
    %c0_17 = arith.constant 0 : index
    %c0_18 = arith.constant 0 : index
    %c0_19 = arith.constant 0 : index
    %50 = vector.load %arg6[%c0_17, %c0_18, %c0_19] : memref<1x8x256xf32, #tpu.memory_space<vmem>>, vector<1x8x256xf32>
    %51 = vector.shape_cast %50 : vector<1x8x256xf32> to vector<8x256xf32>
    %52 = vector.shape_cast %49 : vector<8x256xf32> to vector<1x8x256xf32>
    tpu.vector_store %arg6[%c0_17, %c0_18, %c0_19], %52 {strides = array<i32>} : memref<1x8x256xf32, #tpu.memory_space<vmem>>, vector<1x8x256xf32>,
    return
  }
  func.func @transform_0(%arg0: i32, %arg1: i32) -> (i32, i32, i32, i32) {
    %c0_i32 = arith.constant 0 : i32
    %c0_i32_0 = arith.constant 0 : i32
    %c0_i32_1 = arith.constant 0 : i32
    return %c0_i32, %arg0, %c0_i32_0, %arg1 : i32, i32, i32, i32
  }
  func.func @transform_1(%arg0: i32, %arg1: i32) -> (i32, i32, i32) {
    %c0_i32 = arith.constant 0 : i32
    %c0_i32_0 = arith.constant 0 : i32
    %c0_i32_1 = arith.constant 0 : i32
    %c0_i32_2 = arith.constant 0 : i32
    return %c0_i32, %c0_i32_0, %c0_i32_1 : i32, i32, i32
  }
  func.func @transform_2(%arg0: i32, %arg1: i32) -> (i32, i32) {
    %c0_i32 = arith.constant 0 : i32
    %c0_i32_0 = arith.constant 0 : i32
    %c0_i32_1 = arith.constant 0 : i32
    return %c0_i32, %c0_i32_0 : i32, i32
  }
  func.func @transform_3(%arg0: i32, %arg1: i32) -> (i32, i32) {
    %c0_i32 = arith.constant 0 : i32
    %c0_i32_0 = arith.constant 0 : i32
    %c0_i32_1 = arith.constant 0 : i32
    return %c0_i32, %c0_i32_0 : i32, i32
  }
  func.func @transform_4(%arg0: i32, %arg1: i32) -> (i32, i32, i32) {
    %c0_i32 = arith.constant 0 : i32
    %c0_i32_0 = arith.constant 0 : i32
    return %arg0, %c0_i32, %arg1 : i32, i32, i32
  }
}

</mosaic_0001>

<bundles_post_ra>
// kernel: tpu_custom_call.1
= control target key start
LH: loop header
LB: loop body
LE: loop exit
PB: predicated region body
PF: predicated region fallthrough
CT: control target
= control target key end

     0   :  { %9 = vsyncpa [#allocation4], 0  ;;  %s1215_s0 = inlined_call_operand.vmem [shape: f32[3,2,4,256], index: 0, kind: input, shape index: {}]   ;;  %s1216_s1 = inlined_call_operand.vmem [shape: f32[9,8,4], index: 1, kind: input, shape index: {}]   ;;  %s1217_s2 = inlined_call_operand.vmem [shape: f32[8,1], index: 2, kind: input, shape index: {}]   ;;  %s1218_s3 = inlined_call_operand.vmem [shape: f32[8,1], index: 3, kind: input, shape index: {}]   ;;  %s1219_s4 = inlined_call_operand.hbm [shape: f32[2,8,256], index: 4, kind: output, shape index: {}]  }
   0x1   :  { %11 = vsyncpa [#allocation4 + $0x1], 0  ;;  %s1021_s15 = smov 0   ;;  %s1023_s16 = smov 0  }
   0x2   :  { %s1025_s17 = smov 0   ;;  %s1027_s18 = smov 0  }
   0x3   :  { %s1029_s19 = smov 0   ;;  %s1031_s20 = smov 0  }
   0x4 LB: > { %s752_s21 = sadd.s32 4294967295, %s977_s20   ;;  %s753_s22 = sadd.s32 4294967294, %s977_s20   ;;  %s977_s20 = sphi %s1031_s20, %s17_s20   ;;  %s973_s19 = sphi %s1029_s19, %s1228_s19   ;;  %s969_s18 = sphi %s1027_s18, %s1227_s18   ;;  %s965_s17 = sphi %s1025_s17, %s1226_s17   ;;  %s961_s16 = sphi %s1023_s16, %s1225_s16   ;;  %s957_s15 = sphi %s1021_s15, %s1224_s15  }
   0x5   : > { %s29_s23 = sadd.s32 1, %s973_s19  ;;  %s38_s24 = sadd.s32 1, %s965_s17 }
   0x6   : > { %p31_p0 = scmp.ge.s32.totalorder %s29_s23, 2  ;;  %p45_p1 = scmp.ne.s32.totalorder %s965_s17, %s961_s16 }
   0x7   : > { %p46_p2 = scmp.eq.s32.totalorder %s977_s20, 0  ;;  %p140_p3 = scmp.eq.s32.totalorder %s752_s21, 1 }
   0x8   : > { %s1230_s23 = smov (%p31_p0, %s29_s23), 0  ;;  %p145_p6 = scmp.ne.s32.totalorder %s961_s16, %s957_s15 }
   0x9   : > { %p47_p4 = por %p46_p2, %p45_p1  ;;  %p1060_p5 = por %p140_p3, %p45_p1 }
   0xa   : > { %s33_s26 = ssub.s32 %s973_s19, %s1230_s23  ;;  %p146_p8 = scmp.eq.s32.totalorder %s753_s22, 1 }
   0xb   : > { %p36_p7 = scmp.eq.s32.totalorder %s33_s26, 0  ;;  %p755_p10 = scmp.ge.s32.totalorder %s977_s20, 2 }
   0xc   : > { %p1071_p9 = por %p146_p8, %p145_p6 }
   0xd   : > { %s1069_s27 = scalar_select %p36_p7, %s965_s17, %s38_s24  }
   0xe   : > { %171 = sbr.rel (%p755_p10) target bundleno = 28 (0x1c), region = 28 }
  0x15   : > { %174 = sbr.rel (!%p47_p4) target bundleno = 28 (0x1c), region = 32  ;;  %s176_s29 = sand.u32 (%p47_p4), 1, %s965_s17  }
  0x16   : > { %s783_s30 = sshll.u32 (%p47_p4), %s973_s19, 3  ;;  %s792_s5 = smul.u32 (%p47_p4), 24, %s176_s29 }
  0x17   : > { %s183_s8 = scalar_lea.vmem (%p47_p4), %s1215_s0, %s783_s30 }
  0x18   : > { %v215_v0 = vld [vmem:[%s183_s8] sm:$0xff] (%p47_p4)  ;;  %v217_v1 = vld [vmem:[%s183_s8 + $0x10] sm:$0xff] (%p47_p4)  ;;  %s178_s9 = scalar_lea.vmem (%p47_p4), [#allocation2], %s792_s5 }
  0x19   : > { %v219_v2 = vld [vmem:[%s183_s8 + $0x20] sm:$0xff] (%p47_p4)  ;;  %216 = vst [vmem:[%s178_s9] sm:$0xff] (%p47_p4), %v215_v0  ;;  %218 = vst [vmem:[%s178_s9 + $0x8] sm:$0xff] (%p47_p4), %v217_v1 }
  0x1a   : > { %220 = vst [vmem:[%s178_s9 + $0x10] sm:$0xff] (%p47_p4), %v219_v2 }
  0x1c PF: > { %p758_p11 = scmp.ge.s32.totalorder %s977_s20, 1  ;;  %p225_p12 = scmp.lt.s32.totalorder %s977_s20, 3 }
  0x1e   : > { %p226_p13 = pnand %p758_p11, %p225_p12 }
  0x1f   : > { %s1086_s10 = sand.u32 (!%p226_p13), 1, %s961_s16   ;;  %v259_v3 = vlaneseq (!%p226_p13)  ;;  %v1110_v12 = vmov (!%p226_p13), 0.0   ;;  %v1112_v13 = vmov (!%p226_p13), 0.0   ;;  %s1114_s21 = smov (!%p226_p13), 0  }
  0x20   : > { %229 = sbr.rel (%p226_p13) target bundleno = 431 (0x1af), region = 70  ;;  %s759_s12 = sshll.u32 (!%p226_p13), %s1086_s10, 4 }
  0x21   : > { %s793_s11 = smul.u32 (!%p226_p13), 24, %s1086_s10  ;;  %v1090_v4 = vand.u32 (!%p226_p13), 127, %v259_v3  ;;  %s1108_s14 = scalar_lea.vmem (!%p226_p13), [#allocation3], %s759_s12 }
  0x23   : > { %v261_v5 = vadd.s32 (!%p226_p13), 128, %v1090_v4  ;;  %v266_v6 = vand.u32 (!%p226_p13), 15, %v1090_v4  ;;  %s1106_s13 = scalar_lea.vmem (!%p226_p13), [#allocation2], %s793_s11 }
  0x25   : > { %v273_v7 = vand.u32 (!%p226_p13), 15, %v261_v5  ;;  %v1094_v8 = vadd.s32 (!%p226_p13), 4294967295, %v266_v6  ;;  %v1096_v9 = vadd.s32 (!%p226_p13), 1, %v266_v6 }
  0x27   : > { %v1098_v10 = vadd.s32 4294967295, %v273_v7  ;;  %vm288_vm0 = vcmp.ge.s32.totalorder %v1094_v8, 0  ;;  %v1101_v11 = vadd.s32 1, %v273_v7  ;;  %vm298_vm1 = vcmp.lt.s32.totalorder %v1096_v9, 16 }
  0x29   : > { %vm289_vm2 = vcmp.ge.s32.totalorder %v1098_v10, 0  ;;  %vm299_vm3 = vcmp.lt.s32.totalorder %v1101_v11, 16 }
  0x2a LB: >> { %v991_v14 = vmov 0.0   ;;  %s784_s22 = sshll.u32 %s989_s21, 3  ;;  %s762_s24 = smul.u32 24, %s989_s21  ;;  %vm338_vm4 = vcmask 1043456   ;;  %vm334_vm5 = vcmask 31744   ;;  %vm506_vm6 = vcmp.lt.s32.totalorder %v1090_v4, 127  ;;  %s989_s21 = sphi %s1114_s21, %s307_s21   ;;  %v985_v13 = vphi %v1112_v13, %v1223_v13   ;;  %v981_v12 = vphi %v1110_v12, %v1222_v12  }
  0x2b   : >> { %493 = vmatprep.mubr.f32.mxu0 %v991_v14  ;;  %409 = vmatprep.mubr.f32.mxu1 %v991_v14  ;;  %s312_s26 = scalar_lea.vmem %s1106_s13, %s784_s22 [#allocation2]  ;;  %s992_s6 = smov 127   ;;  %vm321_vm7 = vcmp.lt.s32.totalorder %v1090_v4, 1 }
  0x2c   : >> { %v313_v15 = vld [vmem:[%s312_s26] sm:$0xff]  ;;  %s332_s5 = scalar_lea.vmem %s1216_s1, %s762_s24  ;;  %s993_s7 = smov 1  }
  0x2d   : >> { %502 = vrot.lane.b32.xlu1 %v313_v15, %s992_s6  ;;  %317 = vrot.lane.b32.xlu0 %v313_v15, %s993_s7  ;;  %v315_v16 = vcombine.high %v313_v15, %v313_v15  ;;  %v767_v17 = vld [vmem:[%s332_s5 + $0x8] sm:$0xff]  ;;  %v333_v30 = vld [vmem:[%s332_s5] sm:$0xff]  ;;  %s307_s21 = sadd.s32 1, %s989_s21  }
  0x2e   : >> { %v772_v31 = vld [vmem:[%s332_s5 + $0x10] sm:$0xff]  ;;  %p304_p0 = scmp.ge.s32.totalorder %s307_s21, 3  }
  0x2f   : >> { %768 = vmatprep.subr.msk.mxu0 %vm338_vm4, %v315_v16  ;;  %v601_v40 = vld [vmem:[%s1217_s2] sm:$0xff] (%p304_p0)  ;;  %v994_v41 = vmov (%p304_p0), 0   ;;  %s785_s13 = sshll.u32 (%p304_p0), %s969_s18, 8  ;;  %s650_s21 = sshll.u32 (%p304_p0), %s1108_s14, 4  ;;  %s1166_s21 = int_to_ptr.vmem [resolvable:$true] %s650_s21 }
  0x30   : >> { %769 = vmatpush1.msk.msra.mxu0 %vm338_vm4, %v313_v15  ;;  %878 = vset.pattern.permute.xlu0 (%p304_p0), %v994_v41  ;;  %v609_v42 = vld [vmem:[%s1218_s3] sm:$0xff] (%p304_p0)  ;;  %s1164_s26 = scalar_lea.hbm (%p304_p0), %s1219_s4, %s785_s13  ;;  %s634_s29 = scalar_lea.sflag (%p304_p0), [#allocation4], %s1086_s10 }
  0x31   : >> { %504 = vrot.lane.b32.xlu1 %v315_v16, %s992_s6  ;;  %319 = vrot.lane.b32.xlu0 %v315_v16, %s993_s7  ;;  %s887_s30 = scalar_lea.vmem (%p304_p0), %s1166_s21, 256  ;;  %s995_s18 = smov (%p304_p0), [#allocation3]  }
  0x32   : >> { %770 = vmatmul.mubr.msk.f32.vlgmr.msra.gmra.mrb[0].mxu0 %vm334_vm5, %v767_v17  ;;  %p888_p1 = scmp.ne.s32.totalorder (%p304_p0), %s1166_s21, %s887_s30  ;;  %s891_s5 = sshll.u32 (%p304_p0), %s995_s18, 4  ;;  %s892_s5 = int_to_ptr.vmem [resolvable:$false] %s891_s5 }
  0x33   : >> { %592 = vmatprep.mubr.f32.mxu0 %v991_v14  ;;  %s893_s6 = scalar_lea.vmem (%p304_p0), %s892_s5, 512  ;;  %p894_p4 = scmp.lt.s32.totalorder (%p304_p0), %s1166_s21, %s892_s5 }
  0x34   : > { %p889_p2 = pnand (%p304_p0), %p888_p1, %p1060_p5  ;;  %p895_p6 = scmp.lt.s32.totalorder (%p304_p0), %s893_s6, %s887_s30 }
  0x35   : > { %604 = vperm.xlu0 (%p304_p0), %878, %v601_v40  }
  0x36   : > { %p890_p3 = pneg (%p304_p0), %p889_p2  ;;  %p896_p7 = por (%p304_p0), %p895_p6, %p894_p4 }
  0x38   : > { %p897_p8 = pnand (%p304_p0), %p896_p7, %p890_p3 }
  0x39   : > { %612 = vperm.xlu0 (%p304_p0), %878, %v609_v42  }
  0x9f   : >> { %v503_v18 = vpop.permute.xlu1 %502  ;;  %v318_v19 = vpop.permute.xlu0 %317 }
  0xa3   : >> { %v505_v20 = vpop.permute.xlu1 %504  ;;  %v320_v21 = vpop.permute.xlu0 %319 }
  0xa4   : >> { %v507_v22 = vsel %vm506_vm6, %v503_v18, %v505_v20  ;;  %v508_v23 = vsel %vm506_vm6, %v505_v20, %v503_v18  ;;  %v323_v24 = vsel %vm321_vm7, %v320_v21, %v318_v19  ;;  %v322_v25 = vsel %vm321_vm7, %v318_v19, %v320_v21 }
  0xa5   : >> { %v513_v26 = vsel %vm298_vm1, %v507_v22, 0.0  ;;  %v514_v27 = vsel %vm299_vm3, %v508_v23, 0.0  ;;  %v329_v28 = vsel %vm289_vm2, %v322_v25, 0.0  ;;  %v328_v29 = vsel %vm288_vm0, %v323_v24, 0.0 }
  0xa6   : >> { %763 = vmatprep.subr.msk.mxu1 %vm338_vm4, %v329_v28  ;;  %773 = vmatprep.subr.msk.mxu0 %vm338_vm4, %v514_v27 }
  0xa7   : >> { %764 = vmatpush1.msk.msra.mxu1 %vm338_vm4, %v328_v29  ;;  %774 = vmatpush1.msk.msra.mxu0 %vm338_vm4, %v513_v26 }
  0xa8   : >> { %765 = vmatmul.mubr.msk.f32.vlgmr.msra.gmra.mrb[0].mxu1 %vm334_vm5, %v333_v30  ;;  %775 = vmatmul.mubr.msk.f32.vlgmr.msra.gmra.mrb[0].mxu0 %vm334_vm5, %v772_v31 }
  0xb4   : > { %v605_v43 = vpop.permute.xlu0 (%p304_p0), %604 }
  0xb8   : > { %v613_v46 = vpop.permute.xlu0 (%p304_p0), %612 }
 0x17b   : >> { %v411_v32 = vpop.f32.mrb[0].mxu1  ;;  %v594_v33 = vpop.f32.mrb[0].mxu0  ;;  %306 = sbr.rel (!%p304_p0) target bundleno = 42 (0x2a), region = 125 }
 0x17c   : >> { %v416_v34 = vadd.f32 %v985_v13, %v411_v32  ;;  %v413_v35 = vpop.f32.mrb[1].mxu1  ;;  %v596_v36 = vpop.f32.mrb[1].mxu0 }
 0x17d   : >> { %v417_v37 = vadd.f32 %v981_v12, %v413_v35 }
 0x17e   : >> { %v787_v38 = vadd.f32 %v594_v33, %v416_v34  }
 0x17f   : >> { %v789_v39 = vadd.f32 %v596_v36, %v417_v37  }
 0x180   : >> { %v1223_v13 = vmov %v787_v38  ;;  %v607_v44 = vmul.f32 (%p304_p0), %v787_v38, %v605_v43 }
 0x181   : >> { %v1222_v12 = vmov %v789_v39  ;;  %v608_v45 = vmul.f32 (%p304_p0), %v789_v39, %v605_v43 }
 0x182   : > { %v615_v47 = vadd.f32 %v613_v46, %v607_v44 }
 0x183   : > { %v616_v48 = vadd.f32 %v613_v46, %v608_v45 }
 0x184   : > { %v776_v49 = vmul.f32 -1.442695, %v615_v47 }
 0x185   : > { %v777_v50 = vmul.f32 -1.442695, %v616_v48 }
 0x186   : > { %879 = vpow2.f32 %v776_v49 }
 0x187   : > { %881 = vpow2.f32 %v777_v50 }
 0x190   : > { %v880_v51 = vpop.eup %879 }
 0x191   : > { %v882_v52 = vpop.eup %881  ;;  %v623_v53 = vadd.f32 1.0, %v880_v51 }
 0x192   : > { %v624_v54 = vadd.f32 1.0, %v882_v52 }
 0x193   : > { %883 = vrcp.f32 %v623_v53 }
 0x194   : > { %885 = vrcp.f32 %v624_v54 }
 0x19d   : > { %v884_v55 = vpop.eup %883 }
 0x19e   : > { %v886_v56 = vpop.eup %885  ;;  %v629_v57 = vmul.f32 %v884_v55, %v615_v47 }
 0x19f   : > { %v630_v58 = vmul.f32 %v886_v56, %v616_v48 }
 0x1a0   : > { %631 = vst [vmem:[%s1108_s14] sm:$0xff] %v629_v57 }
 0x1a1   : > { %632 = vst [vmem:[%s1108_s14 + $0x8] sm:$0xff] %v630_v58 }
 0x1a2   : > { %900 = shalt.err (!%p897_p8)
}
 0x1a3   : > { %s901_s10 = scalar_lea.hbm %s1164_s26, 256  ;;  %s905_s8 = scalar_lea.hbm %s1219_s4, 512 }
 0x1a4   : > { %p902_p11 = scmp.ne.s32.totalorder %s1164_s26, %s901_s10  ;;  %p906_p0 = scmp.lt.u32.totalorder %s1164_s26, %s1219_s4 }
 0x1a5   : > { %p907_p1 = scmp.lt.u32.totalorder %s905_s8, %s901_s10  ;;  %p909_p3 = scmp.lt.u32.totalorder %s901_s10, %s1164_s26 }
 0x1a6   : > { %p903_p12 = pnand %p902_p11, %p1060_p5 }
 0x1a7   : > { %p908_p2 = por %p907_p1, %p906_p0 }
 0x1a8   : > { %p904_p13 = pneg %p903_p12 }
 0x1a9   : > { %p910_p4 = por %p909_p3, %p908_p2 }
 0x1ab   : > { %p911_p6 = pnand %p910_p4, %p904_p13 }
 0x1ad   : > { %914 = shalt.err (!%p911_p6)
}
 0x1ae   : > { %794 = dma.vmem_to_hbm [thread:$0]  (%p1060_p5), %s1166_s21, 256, %s1164_s26, %s634_s29  }
 0x1af PF: > { %s662_s12 = sand.u32 1, %s957_s15   ;;  %p797_p7 = pnand %p755_p10, %p1071_p9 }
 0x1b0   : > { %s663_s13 = scalar_lea.sflag [#allocation4], %s662_s12 }
 0x1b1   : > { %952 = dma.done.wait (!%p797_p7), %s663_s13, 256  }
 0x1b2   : > { %954 = vsyncadd (!%p797_p7), %s663_s13, 4294967040  ;;  %s17_s20 = sadd.s32 1, %s977_s20   ;;  %s1224_s15 = smov %s961_s16 }
 0x1b3   : > { %p14_p8 = scmp.ge.s32.totalorder %s17_s20, 4   ;;  %s1225_s16 = smov %s965_s17 }
 0x1b4   : > { %s1226_s17 = smov %s1069_s27  ;;  %s1227_s18 = smov %s973_s19 }
 0x1b5   : > { %s1228_s19 = smov %s1230_s23  ;;  %16 = sbr.rel (!%p14_p8) target bundleno = 4 (0x4), region = 136 }
 0x1bc   :  { %668 = vsyncpa [#allocation4], 1 }
 0x1bd   :  { %670 = vsyncpa [#allocation4 + $0x1], 1 }

</bundles_post_ra>
